<compile_context>
chip_gen: v6e
topology: v6e:2x2x1
jax: 0.10.0
libtpu: 0.0.40
codegen_flags: <defaults>
</compile_context>

<pallas_src>
import functools
import math

import jax
import jax.numpy as jnp
from jax.experimental import pallas as pl
from jax.experimental.pallas import tpu as pltpu


def _layer_norm(x, gamma, beta, eps):
    mu = jnp.mean(x, axis=-1, keepdims=True)
    var = jnp.mean((x - mu) ** 2, axis=-1, keepdims=True)
    return (x - mu) * jax.lax.rsqrt(var + eps) * gamma + beta


def _transformer_layer_kernel(
    x_ref, mask_ref,
    ln1_g_ref, ln1_b_ref, wqkv_ref, bqkv_ref, wo_ref, bo_ref,
    ln2_g_ref, ln2_b_ref, w1_ref, b1_ref, w2_ref, b2_ref,
    out_ref, *, num_heads, eps):
    f32 = jnp.float32
    x = x_ref[...].astype(f32)          # (S, H)  batch dim squeezed by BlockSpec
    m = mask_ref[...].astype(f32)       # (S, S)
    S, H = x.shape
    d_k = H // num_heads
    scale = 1.0 / math.sqrt(d_k)

    # ---- sublayer 1: pre-norm multi-head self-attention + residual ----
    xn = _layer_norm(x, ln1_g_ref[...].astype(f32), ln1_b_ref[...].astype(f32), eps)
    qkv = jnp.dot(xn, wqkv_ref[...].astype(f32), preferred_element_type=f32)
    qkv = qkv + bqkv_ref[...].astype(f32)                       # (S, 3H)
    q, k, v = qkv[:, 0:H], qkv[:, H:2 * H], qkv[:, 2 * H:3 * H]
    wo = wo_ref[...].astype(f32)                                # (H, H)

    attn_out = jnp.zeros((S, H), f32)
    for h in range(num_heads):                                  # static unroll over heads
        sl = slice(h * d_k, (h + 1) * d_k)
        qh, kh, vh = q[:, sl], k[:, sl], v[:, sl]               # (S, d_k)
        s = jnp.einsum("qd,kd->qk", qh, kh, preferred_element_type=f32) * scale
        s = jnp.where(m == 0, jnp.float32(-1e9), s)             # masked_fill(mask==0, -1e9)
        s = s - jnp.max(s, axis=-1, keepdims=True)
        e = jnp.exp(s)
        p = e / jnp.sum(e, axis=-1, keepdims=True)              # softmax over keys
        ctx_h = jnp.dot(p, vh, preferred_element_type=f32)      # (S, d_k)
        # concat(ctx_0..ctx_{nh-1}) @ Wo == sum_h ctx_h @ Wo[h*d_k:(h+1)*d_k, :]
        attn_out = attn_out + jnp.dot(ctx_h, wo[sl, :], preferred_element_type=f32)
    x1 = x + attn_out + bo_ref[...].astype(f32)                 # residual (dropout = identity)

    # ---- sublayer 2: pre-norm position-wise feed-forward + residual ----
    xn2 = _layer_norm(x1, ln2_g_ref[...].astype(f32), ln2_b_ref[...].astype(f32), eps)
    hdd = jnp.dot(xn2, w1_ref[...].astype(f32), preferred_element_type=f32)
    hdd = jax.nn.gelu(hdd + b1_ref[...].astype(f32), approximate=True)
    ffn = jnp.dot(hdd, w2_ref[...].astype(f32), preferred_element_type=f32)
    out = x1 + ffn + b2_ref[...].astype(f32)

    out_ref[...] = out.astype(out_ref.dtype)


def transformer_layer_forward(x, mask, params, *, num_heads, eps=1e-5):
    """x: (B, S, H) in its native dtype; mask: (B, S, S), nonzero == attend."""
    B, S, H = x.shape
    kernel = functools.partial(_transformer_layer_kernel, num_heads=num_heads, eps=eps)

    def rep(a):  # full-array block, constant index_map -> stays resident in VMEM
        return pl.BlockSpec(a.shape, lambda b: (0,) * a.ndim)

    weights = (params["ln1_g"], params["ln1_b"], params["wqkv"], params["bqkv"],
               params["wo"], params["bo"], params["ln2_g"], params["ln2_b"],
               params["w1"], params["b1"], params["w2"], params["b2"])

    grid_spec = pltpu.PrefetchScalarGridSpec(
        num_scalar_prefetch=0,
        grid=(B,),
        in_specs=[pl.BlockSpec((None, S, H), lambda b: (b, 0, 0)),   # x  (batch-squeezed)
                  pl.BlockSpec((None, S, S), lambda b: (b, 0, 0))]   # mask
                 + [rep(w) for w in weights],
        out_specs=pl.BlockSpec((None, S, H), lambda b: (b, 0, 0)),
    )
    return pl.pallas_call(
        kernel,
        out_shape=jax.ShapeDtypeStruct((B, S, H), x.dtype),
        grid_spec=grid_spec,
        compiler_params=pltpu.CompilerParams(dimension_semantics=("parallel",)),
    )(x, mask, *weights)


def init_transformer_layer_params(key, hidden_size, num_heads, feed_forward_size):
    del num_heads  # head count only affects the forward reshape, not the params
    ks = jax.random.split(key, 4)

    def dense(k, fin, fout):
        kw, kb = jax.random.split(k)
        w = jax.random.normal(kw, (fin, fout), jnp.float32) / math.sqrt(fin)
        b = 0.01 * jax.random.normal(kb, (1, fout), jnp.float32)
        return w, b

    wqkv, bqkv = dense(ks[0], hidden_size, 3 * hidden_size)   # fused Q|K|V projection
    wo, bo = dense(ks[1], hidden_size, hidden_size)
    w1, b1 = dense(ks[2], hidden_size, feed_forward_size)
    w2, b2 = dense(ks[3], feed_forward_size, hidden_size)
    return {
        "ln1_g": jnp.ones((1, hidden_size), jnp.float32),
        "ln1_b": jnp.zeros((1, hidden_size), jnp.float32),
        "wqkv": wqkv, "bqkv": bqkv, "wo": wo, "bo": bo,
        "ln2_g": jnp.ones((1, hidden_size), jnp.float32),
        "ln2_b": jnp.zeros((1, hidden_size), jnp.float32),
        "w1": w1, "b1": b1, "w2": w2, "b2": b2,
    }


def transformer_layer_reference(x, mask, p, *, num_heads, eps=1e-5):
    """Pure-JAX reference mirroring the PyTorch module (eval mode)."""
    B, S, H = x.shape
    d_k = H // num_heads
    xn = _layer_norm(x, p["ln1_g"], p["ln1_b"], eps)
    qkv = xn @ p["wqkv"] + p["bqkv"]
    q, k, v = jnp.split(qkv, 3, axis=-1)

    def heads(t):
        return t.reshape(B, S, num_heads, d_k).transpose(0, 2, 1, 3)

    q, k, v = heads(q), heads(k), heads(v)
    s = jnp.einsum("bhqd,bhkd->bhqk", q, k) / math.sqrt(d_k)
    s = jnp.where(mask[:, None, :, :] == 0, -1e9, s)
    p_attn = jax.nn.softmax(s, axis=-1)
    ctx = jnp.einsum("bhqk,bhkd->bhqd", p_attn, v)
    ctx = ctx.transpose(0, 2, 1, 3).reshape(B, S, H)
    x1 = x + ctx @ p["wo"] + p["bo"]
    xn2 = _layer_norm(x1, p["ln2_g"], p["ln2_b"], eps)
    hid = jax.nn.gelu(xn2 @ p["w1"] + p["b1"], approximate=True)
    return x1 + hid @ p["w2"] + p["b2"]


if __name__ == "__main__":
    hidden_size, num_heads, feed_forward_size = 32, 4, 64
    B, S = 2, 8

    key = jax.random.PRNGKey(0)
    k_params, k_x = jax.random.split(key)
    params = init_transformer_layer_params(k_params, hidden_size, num_heads, feed_forward_size)

    x = jax.random.normal(k_x, (B, S, hidden_size), jnp.float32)
    # Padding-style attention mask: batch 0 attends to all 8 positions, batch 1 to the first 5.
    lengths = jnp.array([S, 5], jnp.int32)
    mask = (jnp.arange(S)[None, None, :] < lengths[:, None, None]).astype(jnp.float32)
    mask = jnp.broadcast_to(mask, (B, S, S))

    out = transformer_layer_forward(x, mask, params, num_heads=num_heads)
    jax.block_until_ready(out)

    ref = transformer_layer_reference(x, mask, params, num_heads=num_heads)
    assert out.shape == (B, S, hidden_size)
    assert bool(jnp.all(jnp.isfinite(out))), "non-finite values in kernel output"
    assert jnp.allclose(out, ref, atol=5e-2, rtol=5e-2), (
        f"mismatch vs reference: max abs diff {jnp.max(jnp.abs(out - ref))}")

    print("KERNEL_OK")
</pallas_src>

<mosaic_0001>
module attributes {stable_mosaic.version = 11 : i64} {
  func.func @_transformer_layer_kernel(%arg0: i32, %arg1: memref<1x8x32xf32, #tpu.memory_space<vmem>>, %arg2: memref<1x8x8xf32, #tpu.memory_space<vmem>>, %arg3: memref<1x32xf32, #tpu.memory_space<vmem>>, %arg4: memref<1x32xf32, #tpu.memory_space<vmem>>, %arg5: memref<32x96xf32, #tpu.memory_space<vmem>>, %arg6: memref<1x96xf32, #tpu.memory_space<vmem>>, %arg7: memref<32x32xf32, #tpu.memory_space<vmem>>, %arg8: memref<1x32xf32, #tpu.memory_space<vmem>>, %arg9: memref<1x32xf32, #tpu.memory_space<vmem>>, %arg10: memref<1x32xf32, #tpu.memory_space<vmem>>, %arg11: memref<32x64xf32, #tpu.memory_space<vmem>>, %arg12: memref<1x64xf32, #tpu.memory_space<vmem>>, %arg13: memref<64x32xf32, #tpu.memory_space<vmem>>, %arg14: memref<1x32xf32, #tpu.memory_space<vmem>>, %arg15: memref<1x8x32xf32, #tpu.memory_space<vmem>>) attributes {dimension_semantics = [#tpu.dimension_semantics<parallel>], iteration_bounds = array<i64: 2>, scalar_prefetch = 0 : i64, scratch_operands = 0 : i64, tpu.core_type = #tpu.core_type<tc>, window_params = [{transform_indices = @transform_0, window_bounds = array<i64: 1, 8, 32>}, {transform_indices = @transform_1, window_bounds = array<i64: 1, 8, 8>}, {pipeline_mode = #tpu.pipeline_mode<synchronous>, transform_indices = @transform_2, window_bounds = array<i64: 1, 32>}, {pipeline_mode = #tpu.pipeline_mode<synchronous>, transform_indices = @transform_3, window_bounds = array<i64: 1, 32>}, {pipeline_mode = #tpu.pipeline_mode<synchronous>, transform_indices = @transform_4, window_bounds = array<i64: 32, 96>}, {pipeline_mode = #tpu.pipeline_mode<synchronous>, transform_indices = @transform_5, window_bounds = array<i64: 1, 96>}, {pipeline_mode = #tpu.pipeline_mode<synchronous>, transform_indices = @transform_6, window_bounds = array<i64: 32, 32>}, {pipeline_mode = #tpu.pipeline_mode<synchronous>, transform_indices = @transform_7, window_bounds = array<i64: 1, 32>}, {pipeline_mode = #tpu.pipeline_mode<synchronous>, transform_indices = @transform_8, window_bounds = array<i64: 1, 32>}, {pipeline_mode = #tpu.pipeline_mode<synchronous>, transform_indices = @transform_9, window_bounds = array<i64: 1, 32>}, {pipeline_mode = #tpu.pipeline_mode<synchronous>, transform_indices = @transform_10, window_bounds = array<i64: 32, 64>}, {pipeline_mode = #tpu.pipeline_mode<synchronous>, transform_indices = @transform_11, window_bounds = array<i64: 1, 64>}, {pipeline_mode = #tpu.pipeline_mode<synchronous>, transform_indices = @transform_12, window_bounds = array<i64: 64, 32>}, {pipeline_mode = #tpu.pipeline_mode<synchronous>, transform_indices = @transform_13, window_bounds = array<i64: 1, 32>}, {transform_indices = @transform_14, window_bounds = array<i64: 1, 8, 32>}]} {
    %c0 = arith.constant 0 : index
    %c0_0 = arith.constant 0 : index
    %c0_1 = arith.constant 0 : index
    %0 = vector.load %arg1[%c0, %c0_0, %c0_1] : memref<1x8x32xf32, #tpu.memory_space<vmem>>, vector<1x8x32xf32>
    %1 = vector.shape_cast %0 : vector<1x8x32xf32> to vector<8x32xf32>
    %c0_2 = arith.constant 0 : index
    %c0_3 = arith.constant 0 : index
    %c0_4 = arith.constant 0 : index
    %2 = vector.load %arg2[%c0_2, %c0_3, %c0_4] : memref<1x8x8xf32, #tpu.memory_space<vmem>>, vector<1x8x8xf32>
    %3 = vector.shape_cast %2 : vector<1x8x8xf32> to vector<8x8xf32>
    %c0_5 = arith.constant 0 : index
    %c0_6 = arith.constant 0 : index
    %4 = vector.load %arg3[%c0_5, %c0_6] : memref<1x32xf32, #tpu.memory_space<vmem>>, vector<1x32xf32>
    %c0_7 = arith.constant 0 : index
    %c0_8 = arith.constant 0 : index
    %5 = vector.load %arg4[%c0_7, %c0_8] : memref<1x32xf32, #tpu.memory_space<vmem>>, vector<1x32xf32>
    %cst = arith.constant dense<0.000000e+00> : vector<8xf32>
    %6 = vector.multi_reduction <add>, %1, %cst [1] : vector<8x32xf32> to vector<8xf32>
    %7 = vector.shape_cast %6 : vector<8xf32> to vector<8x1xf32>
    %cst_9 = arith.constant 3.200000e+01 : f32
    %8 = vector.broadcast %cst_9 : f32 to vector<8x1xf32>
    %9 = arith.divf %7, %8 : vector<8x1xf32>
    %10 = vector.broadcast %9 : vector<8x1xf32> to vector<8x32xf32>
    %11 = arith.subf %1, %10 : vector<8x32xf32>
    %12 = arith.mulf %11, %11 : vector<8x32xf32>
    %cst_10 = arith.constant dense<0.000000e+00> : vector<8xf32>
    %13 = vector.multi_reduction <add>, %12, %cst_10 [1] : vector<8x32xf32> to vector<8xf32>
    %14 = vector.shape_cast %13 : vector<8xf32> to vector<8x1xf32>
    %cst_11 = arith.constant 3.200000e+01 : f32
    %15 = vector.broadcast %cst_11 : f32 to vector<8x1xf32>
    %16 = arith.divf %14, %15 : vector<8x1xf32>
    %17 = vector.broadcast %9 : vector<8x1xf32> to vector<8x32xf32>
    %18 = arith.subf %1, %17 : vector<8x32xf32>
    %cst_12 = arith.constant 9.99999974E-6 : f32
    %19 = vector.broadcast %cst_12 : f32 to vector<8x1xf32>
    %20 = arith.addf %16, %19 : vector<8x1xf32>
    %21 = math.rsqrt %20 : vector<8x1xf32>
    %22 = vector.broadcast %21 : vector<8x1xf32> to vector<8x32xf32>
    %23 = arith.mulf %18, %22 : vector<8x32xf32>
    %24 = vector.broadcast %4 : vector<1x32xf32> to vector<8x32xf32>
    %25 = arith.mulf %23, %24 : vector<8x32xf32>
    %26 = vector.broadcast %5 : vector<1x32xf32> to vector<8x32xf32>
    %27 = arith.addf %25, %26 : vector<8x32xf32>
    %c0_13 = arith.constant 0 : index
    %c0_14 = arith.constant 0 : index
    %28 = vector.load %arg5[%c0_13, %c0_14] : memref<32x96xf32, #tpu.memory_space<vmem>>, vector<32x96xf32>
    %cst_15 = arith.constant dense<0.000000e+00> : vector<8x96xf32>
    %29 = tpu.matmul %27, %28, %cst_15 {dimension_numbers = #tpu.dot_dimension_numbers<[1], [0], [0], [1], [0, 0, 1, 1], [], []>} : vector<8x32xf32>, vector<32x96xf32>, vector<8x96xf32> -> vector<8x96xf32>
    %c0_16 = arith.constant 0 : index
    %c0_17 = arith.constant 0 : index
    %30 = vector.load %arg6[%c0_16, %c0_17] : memref<1x96xf32, #tpu.memory_space<vmem>>, vector<1x96xf32>
    %31 = vector.broadcast %30 : vector<1x96xf32> to vector<8x96xf32>
    %32 = arith.addf %29, %31 : vector<8x96xf32>
    %33 = vector.extract_strided_slice %32 {offsets = [0, 0], sizes = [8, 32], strides = [1, 1]} : vector<8x96xf32> to vector<8x32xf32>
    %34 = vector.extract_strided_slice %32 {offsets = [0, 32], sizes = [8, 32], strides = [1, 1]} : vector<8x96xf32> to vector<8x32xf32>
    %35 = vector.extract_strided_slice %32 {offsets = [0, 64], sizes = [8, 32], strides = [1, 1]} : vector<8x96xf32> to vector<8x32xf32>
    %c0_18 = arith.constant 0 : index
    %c0_19 = arith.constant 0 : index
    %36 = vector.load %arg7[%c0_18, %c0_19] : memref<32x32xf32, #tpu.memory_space<vmem>>, vector<32x32xf32>
    %cst_20 = arith.constant 0.000000e+00 : f32
    %37 = vector.broadcast %cst_20 : f32 to vector<8x32xf32>
    %38 = vector.extract_strided_slice %33 {offsets = [0, 0], sizes = [8, 8], strides = [1, 1]} : vector<8x32xf32> to vector<8x8xf32>
    %39 = vector.extract_strided_slice %34 {offsets = [0, 0], sizes = [8, 8], strides = [1, 1]} : vector<8x32xf32> to vector<8x8xf32>
    %40 = vector.extract_strided_slice %35 {offsets = [0, 0], sizes = [8, 8], strides = [1, 1]} : vector<8x32xf32> to vector<8x8xf32>
    "tpu.trace_start"() <{level = 10 : i32, message = "qd,kd->qk"}> : () -> ()
    %cst_21 = arith.constant dense<0.000000e+00> : vector<8x8xf32>
    %41 = tpu.matmul %38, %39, %cst_21 {dimension_numbers = #tpu.dot_dimension_numbers<[1], [1], [0], [0], [0, 0, 1, 0], [], []>} : vector<8x8xf32>, vector<8x8xf32>, vector<8x8xf32> -> vector<8x8xf32>
    "tpu.trace_stop"() : () -> ()
    %cst_22 = arith.constant 0.353553385 : f32
    %42 = vector.broadcast %cst_22 : f32 to vector<8x8xf32>
    %43 = arith.mulf %41, %42 : vector<8x8xf32>
    %cst_23 = arith.constant 0.000000e+00 : f32
    %44 = vector.broadcast %cst_23 : f32 to vector<8x8xf32>
    %45 = arith.cmpf oeq, %3, %44 : vector<8x8xf32>
    %cst_24 = arith.constant -1.000000e+09 : f32
    %46 = vector.broadcast %cst_24 : f32 to vector<8x8xf32>
    %47 = arith.select %45, %46, %43 : vector<8x8xi1>, vector<8x8xf32>
    %cst_25 = arith.constant dense<0xFF800000> : vector<8xf32>
    %48 = vector.multi_reduction <maximumf>, %47, %cst_25 [1] : vector<8x8xf32> to vector<8xf32>
    %49 = vector.shape_cast %48 : vector<8xf32> to vector<8x1xf32>
    %50 = vector.broadcast %49 : vector<8x1xf32> to vector<8x8xf32>
    %51 = arith.subf %47, %50 : vector<8x8xf32>
    %52 = math.exp %51 : vector<8x8xf32>
    %cst_26 = arith.constant dense<0.000000e+00> : vector<8xf32>
    %53 = vector.multi_reduction <add>, %52, %cst_26 [1] : vector<8x8xf32> to vector<8xf32>
    %54 = vector.shape_cast %53 : vector<8xf32> to vector<8x1xf32>
    %55 = vector.broadcast %54 : vector<8x1xf32> to vector<8x8xf32>
    %56 = arith.divf %52, %55 : vector<8x8xf32>
    %cst_27 = arith.constant dense<0.000000e+00> : vector<8x8xf32>
    %57 = tpu.matmul %56, %40, %cst_27 {dimension_numbers = #tpu.dot_dimension_numbers<[1], [0], [0], [1], [0, 0, 1, 1], [], []>} : vector<8x8xf32>, vector<8x8xf32>, vector<8x8xf32> -> vector<8x8xf32>
    %58 = vector.extract_strided_slice %36 {offsets = [0, 0], sizes = [8, 32], strides = [1, 1]} : vector<32x32xf32> to vector<8x32xf32>
    %cst_28 = arith.constant dense<0.000000e+00> : vector<8x32xf32>
    %59 = tpu.matmul %57, %58, %cst_28 {dimension_numbers = #tpu.dot_dimension_numbers<[1], [0], [0], [1], [0, 0, 1, 1], [], []>} : vector<8x8xf32>, vector<8x32xf32>, vector<8x32xf32> -> vector<8x32xf32>
    %60 = arith.addf %37, %59 : vector<8x32xf32>
    %61 = vector.extract_strided_slice %33 {offsets = [0, 8], sizes = [8, 8], strides = [1, 1]} : vector<8x32xf32> to vector<8x8xf32>
    %62 = vector.extract_strided_slice %34 {offsets = [0, 8], sizes = [8, 8], strides = [1, 1]} : vector<8x32xf32> to vector<8x8xf32>
    %63 = vector.extract_strided_slice %35 {offsets = [0, 8], sizes = [8, 8], strides = [1, 1]} : vector<8x32xf32> to vector<8x8xf32>
    "tpu.trace_start"() <{level = 10 : i32, message = "qd,kd->qk"}> : () -> ()
    %cst_29 = arith.constant dense<0.000000e+00> : vector<8x8xf32>
    %64 = tpu.matmul %61, %62, %cst_29 {dimension_numbers = #tpu.dot_dimension_numbers<[1], [1], [0], [0], [0, 0, 1, 0], [], []>} : vector<8x8xf32>, vector<8x8xf32>, vector<8x8xf32> -> vector<8x8xf32>
    "tpu.trace_stop"() : () -> ()
    %cst_30 = arith.constant 0.353553385 : f32
    %65 = vector.broadcast %cst_30 : f32 to vector<8x8xf32>
    %66 = arith.mulf %64, %65 : vector<8x8xf32>
    %cst_31 = arith.constant 0.000000e+00 : f32
    %67 = vector.broadcast %cst_31 : f32 to vector<8x8xf32>
    %68 = arith.cmpf oeq, %3, %67 : vector<8x8xf32>
    %cst_32 = arith.constant -1.000000e+09 : f32
    %69 = vector.broadcast %cst_32 : f32 to vector<8x8xf32>
    %70 = arith.select %68, %69, %66 : vector<8x8xi1>, vector<8x8xf32>
    %cst_33 = arith.constant dense<0xFF800000> : vector<8xf32>
    %71 = vector.multi_reduction <maximumf>, %70, %cst_33 [1] : vector<8x8xf32> to vector<8xf32>
    %72 = vector.shape_cast %71 : vector<8xf32> to vector<8x1xf32>
    %73 = vector.broadcast %72 : vector<8x1xf32> to vector<8x8xf32>
    %74 = arith.subf %70, %73 : vector<8x8xf32>
    %75 = math.exp %74 : vector<8x8xf32>
    %cst_34 = arith.constant dense<0.000000e+00> : vector<8xf32>
    %76 = vector.multi_reduction <add>, %75, %cst_34 [1] : vector<8x8xf32> to vector<8xf32>
    %77 = vector.shape_cast %76 : vector<8xf32> to vector<8x1xf32>
    %78 = vector.broadcast %77 : vector<8x1xf32> to vector<8x8xf32>
    %79 = arith.divf %75, %78 : vector<8x8xf32>
    %cst_35 = arith.constant dense<0.000000e+00> : vector<8x8xf32>
    %80 = tpu.matmul %79, %63, %cst_35 {dimension_numbers = #tpu.dot_dimension_numbers<[1], [0], [0], [1], [0, 0, 1, 1], [], []>} : vector<8x8xf32>, vector<8x8xf32>, vector<8x8xf32> -> vector<8x8xf32>
    %81 = vector.extract_strided_slice %36 {offsets = [8, 0], sizes = [8, 32], strides = [1, 1]} : vector<32x32xf32> to vector<8x32xf32>
    %cst_36 = arith.constant dense<0.000000e+00> : vector<8x32xf32>
    %82 = tpu.matmul %80, %81, %cst_36 {dimension_numbers = #tpu.dot_dimension_numbers<[1], [0], [0], [1], [0, 0, 1, 1], [], []>} : vector<8x8xf32>, vector<8x32xf32>, vector<8x32xf32> -> vector<8x32xf32>
    %83 = arith.addf %60, %82 : vector<8x32xf32>
    %84 = vector.extract_strided_slice %33 {offsets = [0, 16], sizes = [8, 8], strides = [1, 1]} : vector<8x32xf32> to vector<8x8xf32>
    %85 = vector.extract_strided_slice %34 {offsets = [0, 16], sizes = [8, 8], strides = [1, 1]} : vector<8x32xf32> to vector<8x8xf32>
    %86 = vector.extract_strided_slice %35 {offsets = [0, 16], sizes = [8, 8], strides = [1, 1]} : vector<8x32xf32> to vector<8x8xf32>
    "tpu.trace_start"() <{level = 10 : i32, message = "qd,kd->qk"}> : () -> ()
    %cst_37 = arith.constant dense<0.000000e+00> : vector<8x8xf32>
    %87 = tpu.matmul %84, %85, %cst_37 {dimension_numbers = #tpu.dot_dimension_numbers<[1], [1], [0], [0], [0, 0, 1, 0], [], []>} : vector<8x8xf32>, vector<8x8xf32>, vector<8x8xf32> -> vector<8x8xf32>
    "tpu.trace_stop"() : () -> ()
    %cst_38 = arith.constant 0.353553385 : f32
    %88 = vector.broadcast %cst_38 : f32 to vector<8x8xf32>
    %89 = arith.mulf %87, %88 : vector<8x8xf32>
    %cst_39 = arith.constant 0.000000e+00 : f32
    %90 = vector.broadcast %cst_39 : f32 to vector<8x8xf32>
    %91 = arith.cmpf oeq, %3, %90 : vector<8x8xf32>
    %cst_40 = arith.constant -1.000000e+09 : f32
    %92 = vector.broadcast %cst_40 : f32 to vector<8x8xf32>
    %93 = arith.select %91, %92, %89 : vector<8x8xi1>, vector<8x8xf32>
    %cst_41 = arith.constant dense<0xFF800000> : vector<8xf32>
    %94 = vector.multi_reduction <maximumf>, %93, %cst_41 [1] : vector<8x8xf32> to vector<8xf32>
    %95 = vector.shape_cast %94 : vector<8xf32> to vector<8x1xf32>
    %96 = vector.broadcast %95 : vector<8x1xf32> to vector<8x8xf32>
    %97 = arith.subf %93, %96 : vector<8x8xf32>
    %98 = math.exp %97 : vector<8x8xf32>
    %cst_42 = arith.constant dense<0.000000e+00> : vector<8xf32>
    %99 = vector.multi_reduction <add>, %98, %cst_42 [1] : vector<8x8xf32> to vector<8xf32>
    %100 = vector.shape_cast %99 : vector<8xf32> to vector<8x1xf32>
    %101 = vector.broadcast %100 : vector<8x1xf32> to vector<8x8xf32>
    %102 = arith.divf %98, %101 : vector<8x8xf32>
    %cst_43 = arith.constant dense<0.000000e+00> : vector<8x8xf32>
    %103 = tpu.matmul %102, %86, %cst_43 {dimension_numbers = #tpu.dot_dimension_numbers<[1], [0], [0], [1], [0, 0, 1, 1], [], []>} : vector<8x8xf32>, vector<8x8xf32>, vector<8x8xf32> -> vector<8x8xf32>
    %104 = vector.extract_strided_slice %36 {offsets = [16, 0], sizes = [8, 32], strides = [1, 1]} : vector<32x32xf32> to vector<8x32xf32>
    %cst_44 = arith.constant dense<0.000000e+00> : vector<8x32xf32>
    %105 = tpu.matmul %103, %104, %cst_44 {dimension_numbers = #tpu.dot_dimension_numbers<[1], [0], [0], [1], [0, 0, 1, 1], [], []>} : vector<8x8xf32>, vector<8x32xf32>, vector<8x32xf32> -> vector<8x32xf32>
    %106 = arith.addf %83, %105 : vector<8x32xf32>
    %107 = vector.extract_strided_slice %33 {offsets = [0, 24], sizes = [8, 8], strides = [1, 1]} : vector<8x32xf32> to vector<8x8xf32>
    %108 = vector.extract_strided_slice %34 {offsets = [0, 24], sizes = [8, 8], strides = [1, 1]} : vector<8x32xf32> to vector<8x8xf32>
    %109 = vector.extract_strided_slice %35 {offsets = [0, 24], sizes = [8, 8], strides = [1, 1]} : vector<8x32xf32> to vector<8x8xf32>
    "tpu.trace_start"() <{level = 10 : i32, message = "qd,kd->qk"}> : () -> ()
    %cst_45 = arith.constant dense<0.000000e+00> : vector<8x8xf32>
    %110 = tpu.matmul %107, %108, %cst_45 {dimension_numbers = #tpu.dot_dimension_numbers<[1], [1], [0], [0], [0, 0, 1, 0], [], []>} : vector<8x8xf32>, vector<8x8xf32>, vector<8x8xf32> -> vector<8x8xf32>
    "tpu.trace_stop"() : () -> ()
    %cst_46 = arith.constant 0.353553385 : f32
    %111 = vector.broadcast %cst_46 : f32 to vector<8x8xf32>
    %112 = arith.mulf %110, %111 : vector<8x8xf32>
    %cst_47 = arith.constant 0.000000e+00 : f32
    %113 = vector.broadcast %cst_47 : f32 to vector<8x8xf32>
    %114 = arith.cmpf oeq, %3, %113 : vector<8x8xf32>
    %cst_48 = arith.constant -1.000000e+09 : f32
    %115 = vector.broadcast %cst_48 : f32 to vector<8x8xf32>
    %116 = arith.select %114, %115, %112 : vector<8x8xi1>, vector<8x8xf32>
    %cst_49 = arith.constant dense<0xFF800000> : vector<8xf32>
    %117 = vector.multi_reduction <maximumf>, %116, %cst_49 [1] : vector<8x8xf32> to vector<8xf32>
    %118 = vector.shape_cast %117 : vector<8xf32> to vector<8x1xf32>
    %119 = vector.broadcast %118 : vector<8x1xf32> to vector<8x8xf32>
    %120 = arith.subf %116, %119 : vector<8x8xf32>
    %121 = math.exp %120 : vector<8x8xf32>
    %cst_50 = arith.constant dense<0.000000e+00> : vector<8xf32>
    %122 = vector.multi_reduction <add>, %121, %cst_50 [1] : vector<8x8xf32> to vector<8xf32>
    %123 = vector.shape_cast %122 : vector<8xf32> to vector<8x1xf32>
    %124 = vector.broadcast %123 : vector<8x1xf32> to vector<8x8xf32>
    %125 = arith.divf %121, %124 : vector<8x8xf32>
    %cst_51 = arith.constant dense<0.000000e+00> : vector<8x8xf32>
    %126 = tpu.matmul %125, %109, %cst_51 {dimension_numbers = #tpu.dot_dimension_numbers<[1], [0], [0], [1], [0, 0, 1, 1], [], []>} : vector<8x8xf32>, vector<8x8xf32>, vector<8x8xf32> -> vector<8x8xf32>
    %127 = vector.extract_strided_slice %36 {offsets = [24, 0], sizes = [8, 32], strides = [1, 1]} : vector<32x32xf32> to vector<8x32xf32>
    %cst_52 = arith.constant dense<0.000000e+00> : vector<8x32xf32>
    %128 = tpu.matmul %126, %127, %cst_52 {dimension_numbers = #tpu.dot_dimension_numbers<[1], [0], [0], [1], [0, 0, 1, 1], [], []>} : vector<8x8xf32>, vector<8x32xf32>, vector<8x32xf32> -> vector<8x32xf32>
    %129 = arith.addf %106, %128 : vector<8x32xf32>
    %130 = arith.addf %1, %129 : vector<8x32xf32>
    %c0_53 = arith.constant 0 : index
    %c0_54 = arith.constant 0 : index
    %131 = vector.load %arg8[%c0_53, %c0_54] : memref<1x32xf32, #tpu.memory_space<vmem>>, vector<1x32xf32>
    %132 = vector.broadcast %131 : vector<1x32xf32> to vector<8x32xf32>
    %133 = arith.addf %130, %132 : vector<8x32xf32>
    %c0_55 = arith.constant 0 : index
    %c0_56 = arith.constant 0 : index
    %134 = vector.load %arg9[%c0_55, %c0_56] : memref<1x32xf32, #tpu.memory_space<vmem>>, vector<1x32xf32>
    %c0_57 = arith.constant 0 : index
    %c0_58 = arith.constant 0 : index
    %135 = vector.load %arg10[%c0_57, %c0_58] : memref<1x32xf32, #tpu.memory_space<vmem>>, vector<1x32xf32>
    %cst_59 = arith.constant dense<0.000000e+00> : vector<8xf32>
    %136 = vector.multi_reduction <add>, %133, %cst_59 [1] : vector<8x32xf32> to vector<8xf32>
    %137 = vector.shape_cast %136 : vector<8xf32> to vector<8x1xf32>
    %cst_60 = arith.constant 3.200000e+01 : f32
    %138 = vector.broadcast %cst_60 : f32 to vector<8x1xf32>
    %139 = arith.divf %137, %138 : vector<8x1xf32>
    %140 = vector.broadcast %139 : vector<8x1xf32> to vector<8x32xf32>
    %141 = arith.subf %133, %140 : vector<8x32xf32>
    %142 = arith.mulf %141, %141 : vector<8x32xf32>
    %cst_61 = arith.constant dense<0.000000e+00> : vector<8xf32>
    %143 = vector.multi_reduction <add>, %142, %cst_61 [1] : vector<8x32xf32> to vector<8xf32>
    %144 = vector.shape_cast %143 : vector<8xf32> to vector<8x1xf32>
    %cst_62 = arith.constant 3.200000e+01 : f32
    %145 = vector.broadcast %cst_62 : f32 to vector<8x1xf32>
    %146 = arith.divf %144, %145 : vector<8x1xf32>
    %147 = vector.broadcast %139 : vector<8x1xf32> to vector<8x32xf32>
    %148 = arith.subf %133, %147 : vector<8x32xf32>
    %cst_63 = arith.constant 9.99999974E-6 : f32
    %149 = vector.broadcast %cst_63 : f32 to vector<8x1xf32>
    %150 = arith.addf %146, %149 : vector<8x1xf32>
    %151 = math.rsqrt %150 : vector<8x1xf32>
    %152 = vector.broadcast %151 : vector<8x1xf32> to vector<8x32xf32>
    %153 = arith.mulf %148, %152 : vector<8x32xf32>
    %154 = vector.broadcast %134 : vector<1x32xf32> to vector<8x32xf32>
    %155 = arith.mulf %153, %154 : vector<8x32xf32>
    %156 = vector.broadcast %135 : vector<1x32xf32> to vector<8x32xf32>
    %157 = arith.addf %155, %156 : vector<8x32xf32>
    %c0_64 = arith.constant 0 : index
    %c0_65 = arith.constant 0 : index
    %158 = vector.load %arg11[%c0_64, %c0_65] : memref<32x64xf32, #tpu.memory_space<vmem>>, vector<32x64xf32>
    %cst_66 = arith.constant dense<0.000000e+00> : vector<8x64xf32>
    %159 = tpu.matmul %157, %158, %cst_66 {dimension_numbers = #tpu.dot_dimension_numbers<[1], [0], [0], [1], [0, 0, 1, 1], [], []>} : vector<8x32xf32>, vector<32x64xf32>, vector<8x64xf32> -> vector<8x64xf32>
    %c0_67 = arith.constant 0 : index
    %c0_68 = arith.constant 0 : index
    %160 = vector.load %arg12[%c0_67, %c0_68] : memref<1x64xf32, #tpu.memory_space<vmem>>, vector<1x64xf32>
    %161 = vector.broadcast %160 : vector<1x64xf32> to vector<8x64xf32>
    %162 = arith.addf %159, %161 : vector<8x64xf32>
    %163 = arith.mulf %162, %162 : vector<8x64xf32>
    %164 = arith.mulf %162, %163 : vector<8x64xf32>
    %cst_69 = arith.constant 4.471500e-02 : f32
    %165 = vector.broadcast %cst_69 : f32 to vector<8x64xf32>
    %166 = arith.mulf %165, %164 : vector<8x64xf32>
    %167 = arith.addf %162, %166 : vector<8x64xf32>
    %cst_70 = arith.constant 0.797884583 : f32
    %168 = vector.broadcast %cst_70 : f32 to vector<8x64xf32>
    %169 = arith.mulf %168, %167 : vector<8x64xf32>
    %170 = math.tanh %169 : vector<8x64xf32>
    %cst_71 = arith.constant 1.000000e+00 : f32
    %171 = vector.broadcast %cst_71 : f32 to vector<8x64xf32>
    %172 = arith.addf %171, %170 : vector<8x64xf32>
    %cst_72 = arith.constant 5.000000e-01 : f32
    %173 = vector.broadcast %cst_72 : f32 to vector<8x64xf32>
    %174 = arith.mulf %173, %172 : vector<8x64xf32>
    %175 = arith.mulf %162, %174 : vector<8x64xf32>
    %c0_73 = arith.constant 0 : index
    %c0_74 = arith.constant 0 : index
    %176 = vector.load %arg13[%c0_73, %c0_74] : memref<64x32xf32, #tpu.memory_space<vmem>>, vector<64x32xf32>
    %cst_75 = arith.constant dense<0.000000e+00> : vector<8x32xf32>
    %177 = tpu.matmul %175, %176, %cst_75 {dimension_numbers = #tpu.dot_dimension_numbers<[1], [0], [0], [1], [0, 0, 1, 1], [], []>} : vector<8x64xf32>, vector<64x32xf32>, vector<8x32xf32> -> vector<8x32xf32>
    %178 = arith.addf %133, %177 : vector<8x32xf32>
    %c0_76 = arith.constant 0 : index
    %c0_77 = arith.constant 0 : index
    %179 = vector.load %arg14[%c0_76, %c0_77] : memref<1x32xf32, #tpu.memory_space<vmem>>, vector<1x32xf32>
    %180 = vector.broadcast %179 : vector<1x32xf32> to vector<8x32xf32>
    %181 = arith.addf %178, %180 : vector<8x32xf32>
    %c0_78 = arith.constant 0 : index
    %c0_79 = arith.constant 0 : index
    %c0_80 = arith.constant 0 : index
    %182 = vector.load %arg15[%c0_78, %c0_79, %c0_80] : memref<1x8x32xf32, #tpu.memory_space<vmem>>, vector<1x8x32xf32>
    %183 = vector.shape_cast %182 : vector<1x8x32xf32> to vector<8x32xf32>
    %184 = vector.shape_cast %181 : vector<8x32xf32> to vector<1x8x32xf32>
    tpu.vector_store %arg15[%c0_78, %c0_79, %c0_80], %184 {strides = array<i32>} : memref<1x8x32xf32, #tpu.memory_space<vmem>>, vector<1x8x32xf32>,
    return
  }
  func.func @transform_0(%arg0: i32) -> (i32, i32, i32) {
    %c0_i32 = arith.constant 0 : i32
    %c0_i32_0 = arith.constant 0 : i32
    %c0_i32_1 = arith.constant 0 : i32
    return %arg0, %c0_i32, %c0_i32_0 : i32, i32, i32
  }
  func.func @transform_1(%arg0: i32) -> (i32, i32, i32) {
    %c0_i32 = arith.constant 0 : i32
    %c0_i32_0 = arith.constant 0 : i32
    %c0_i32_1 = arith.constant 0 : i32
    return %arg0, %c0_i32, %c0_i32_0 : i32, i32, i32
  }
  func.func @transform_2(%arg0: i32) -> (i32, i32) {
    %c0_i32 = arith.constant 0 : i32
    %c0_i32_0 = arith.constant 0 : i32
    %c0_i32_1 = arith.constant 0 : i32
    return %c0_i32, %c0_i32_0 : i32, i32
  }
  func.func @transform_3(%arg0: i32) -> (i32, i32) {
    %c0_i32 = arith.constant 0 : i32
    %c0_i32_0 = arith.constant 0 : i32
    %c0_i32_1 = arith.constant 0 : i32
    return %c0_i32, %c0_i32_0 : i32, i32
  }
  func.func @transform_4(%arg0: i32) -> (i32, i32) {
    %c0_i32 = arith.constant 0 : i32
    %c0_i32_0 = arith.constant 0 : i32
    %c0_i32_1 = arith.constant 0 : i32
    return %c0_i32, %c0_i32_0 : i32, i32
  }
  func.func @transform_5(%arg0: i32) -> (i32, i32) {
    %c0_i32 = arith.constant 0 : i32
    %c0_i32_0 = arith.constant 0 : i32
    %c0_i32_1 = arith.constant 0 : i32
    return %c0_i32, %c0_i32_0 : i32, i32
  }
  func.func @transform_6(%arg0: i32) -> (i32, i32) {
    %c0_i32 = arith.constant 0 : i32
    %c0_i32_0 = arith.constant 0 : i32
    %c0_i32_1 = arith.constant 0 : i32
    return %c0_i32, %c0_i32_0 : i32, i32
  }
  func.func @transform_7(%arg0: i32) -> (i32, i32) {
    %c0_i32 = arith.constant 0 : i32
    %c0_i32_0 = arith.constant 0 : i32
    %c0_i32_1 = arith.constant 0 : i32
    return %c0_i32, %c0_i32_0 : i32, i32
  }
  func.func @transform_8(%arg0: i32) -> (i32, i32) {
    %c0_i32 = arith.constant 0 : i32
    %c0_i32_0 = arith.constant 0 : i32
    %c0_i32_1 = arith.constant 0 : i32
    return %c0_i32, %c0_i32_0 : i32, i32
  }
  func.func @transform_9(%arg0: i32) -> (i32, i32) {
    %c0_i32 = arith.constant 0 : i32
    %c0_i32_0 = arith.constant 0 : i32
    %c0_i32_1 = arith.constant 0 : i32
    return %c0_i32, %c0_i32_0 : i32, i32
  }
  func.func @transform_10(%arg0: i32) -> (i32, i32) {
    %c0_i32 = arith.constant 0 : i32
    %c0_i32_0 = arith.constant 0 : i32
    %c0_i32_1 = arith.constant 0 : i32
    return %c0_i32, %c0_i32_0 : i32, i32
  }
  func.func @transform_11(%arg0: i32) -> (i32, i32) {
    %c0_i32 = arith.constant 0 : i32
    %c0_i32_0 = arith.constant 0 : i32
    %c0_i32_1 = arith.constant 0 : i32
    return %c0_i32, %c0_i32_0 : i32, i32
  }
  func.func @transform_12(%arg0: i32) -> (i32, i32) {
    %c0_i32 = arith.constant 0 : i32
    %c0_i32_0 = arith.constant 0 : i32
    %c0_i32_1 = arith.constant 0 : i32
    return %c0_i32, %c0_i32_0 : i32, i32
  }
  func.func @transform_13(%arg0: i32) -> (i32, i32) {
    %c0_i32 = arith.constant 0 : i32
    %c0_i32_0 = arith.constant 0 : i32
    %c0_i32_1 = arith.constant 0 : i32
    return %c0_i32, %c0_i32_0 : i32, i32
  }
  func.func @transform_14(%arg0: i32) -> (i32, i32, i32) {
    %c0_i32 = arith.constant 0 : i32
    %c0_i32_0 = arith.constant 0 : i32
    %c0_i32_1 = arith.constant 0 : i32
    return %arg0, %c0_i32, %c0_i32_0 : i32, i32, i32
  }
}

</mosaic_0001>

<bundles_post_ra>
// kernel: tpu_custom_call.1
= control target key start
LH: loop header
LB: loop body
LE: loop exit
PB: predicated region body
PF: predicated region fallthrough
CT: control target
= control target key end

     0   :  { %s2832_s0 = inlined_call_operand.hbm [shape: f32[2,8,32], index: 0, kind: input, shape index: {}]   ;;  %s2833_s1 = inlined_call_operand.hbm [shape: f32[2,8,8], index: 1, kind: input, shape index: {}]   ;;  %s2834_s2 = inlined_call_operand.vmem [shape: f32[1,32], index: 2, kind: input, shape index: {}]   ;;  %s2835_s3 = inlined_call_operand.vmem [shape: f32[1,32], index: 3, kind: input, shape index: {}]   ;;  %s2836_s4 = inlined_call_operand.vmem [shape: f32[32,96], index: 4, kind: input, shape index: {}]   ;;  %s2837_s5 = inlined_call_operand.vmem [shape: f32[1,96], index: 5, kind: input, shape index: {}]   ;;  %s2838_s6 = inlined_call_operand.vmem [shape: f32[32,32], index: 6, kind: input, shape index: {}]   ;;  %s2839_s7 = inlined_call_operand.vmem [shape: f32[1,32], index: 7, kind: input, shape index: {}]   ;;  %s2840_s8 = inlined_call_operand.vmem [shape: f32[1,32], index: 8, kind: input, shape index: {}]   ;;  %s2841_s9 = inlined_call_operand.vmem [shape: f32[1,32], index: 9, kind: input, shape index: {}]   ;;  %s2842_s10 = inlined_call_operand.vmem [shape: f32[32,64], index: 10, kind: input, shape index: {}]   ;;  %s2843_s11 = inlined_call_operand.vmem [shape: f32[1,64], index: 11, kind: input, shape index: {}]   ;;  %s2844_s12 = inlined_call_operand.vmem [shape: f32[64,32], index: 12, kind: input, shape index: {}]   ;;  %s2845_s13 = inlined_call_operand.vmem [shape: f32[1,32], index: 13, kind: input, shape index: {}]   ;;  %s2846_s14 = inlined_call_operand.hbm [shape: f32[2,8,32], index: 14, kind: output, shape index: {}]  }
   0x1   :  { %2857 = sst [smem:[#allocation16_spill]] %s2832_s0 }
   0x2   :  { %2858 = sst [smem:[#allocation17_spill]] %s2845_s13 }
   0x3   :  { %2859 = sst [smem:[#allocation18_spill]] %s2846_s14 }
   0x4   :  { %19 = vsyncpa [#allocation3], 0 }
   0x5   :  { %21 = vsyncpa [#allocation3 + $0x1], 0 }
   0x6   :  { %22 = vsyncpa [#allocation6], 0 }
   0x7   :  { %24 = vsyncpa [#allocation6 + $0x1], 0 }
   0x8   :  { %25 = vsyncpa [#allocation4], 0 }
   0x9   :  { %27 = vsyncpa [#allocation4 + $0x1], 0  ;;  %s2423_s29 = smov 0   ;;  %s2425_s30 = smov 0  }
   0xa   :  { %s2427_s15 = smov 0   ;;  %s2429_s16 = smov 0  }
   0xb LB: > { %2860 = sst [smem:[#allocation11_spill]] %s2318_s29  ;;  %s2444_s17 = sadd.s32 4294967295, %s2330_s16   ;;  %s2330_s16 = sphi %s2429_s16, %s2885_s16   ;;  %s2326_s15 = sphi %s2427_s15, %s2887_s15   ;;  %s2322_s30 = sphi %s2425_s30, %s2889_s30   ;;  %s2318_s29 = sphi %s2423_s29, %s2888_s29  }
   0xc   : > { %2861 = sst [smem:[#allocation12_spill]] %s2326_s15  ;;  %s1934_s18 = sadd.s32 4294967294, %s2330_s16  }
   0xd   : > { %s2448_s19 = sadd.s32 1, %s2330_s16   ;;  %s40_s20 = sadd.s32 1, %s2326_s15 }
   0xe   : > { %2862 = sst [smem:[#allocation13_spill]] %s2448_s19  ;;  %s37_s21 = ssub.s32 %s2330_s16, %s2448_s19 }
   0xf   : > { %p47_p0 = scmp.ne.s32.totalorder %s2326_s15, %s2322_s30  ;;  %p38_p1 = scmp.eq.s32.totalorder %s37_s21, 0 }
  0x10   : > { %p48_p2 = scmp.eq.s32.totalorder %s2330_s16, 0  ;;  %p53_p3 = scmp.ne.s32.totalorder %s2322_s30, %s2318_s29 }
  0x11   : > { %p54_p4 = scmp.eq.s32.totalorder %s2444_s17, 0  ;;  %p355_p7 = scmp.eq.s32.totalorder %s2444_s17, 1 }
  0x12   : > { %s2460_s22 = scalar_select %p38_p1, %s2326_s15, %s40_s20  }
  0x13   : > { %p2462_p5 = por %p48_p2, %p47_p0  ;;  %p2466_p6 = por %p54_p4, %p53_p3 }
  0x14   : > { %2863 = sst [smem:[#allocation14_spill]] %s2460_s22  ;;  %p361_p8 = scmp.eq.s32.totalorder %s1934_s18, 1 }
  0x15   : > { %s2865_s24 = scalar_select %p2466_p6, 1, 0 }
  0x16   : > { %p2137_p10 = scmp.lt.s32.totalorder %s2330_s16, 2  ;;  %p2473_p11 = por %p355_p7, %p47_p0 }
  0x17   : > { %p2477_p12 = por %p361_p8, %p53_p3  ;;  %s2482_s27 = sand.u32 1, %s2326_s15  }
  0x18   : > { %s2866_s25 = scalar_select %p2473_p11, 1, 0 }
  0x19   : > { %s2867_s26 = scalar_select %p2477_p12, 1, 0 }
  0x1a   : > { %s2852_s28 = sshll.u32 %s2330_s16, 7  ;;  %s2851_s20 = sshll.u32 %s2482_s27, 3 }
  0x1b   : > { %2868 = sst [smem:[#allocation15_spill]] %s2867_s26  ;;  %s421_s19 = scalar_lea.vmem [#allocation2], %s2851_s20 }
  0x1c   : > { %s2869_s0 = sld [smem:[#allocation16_spill]]  ;;  %s428_s29 = sshll.u32 %s421_s19, 4  ;;  %s2501_s29 = int_to_ptr.vmem [resolvable:$true] %s428_s29 }
  0x1d   : > { %p2497_p13 = pnand %p2137_p10, %p2462_p5  ;;  %s418_s21 = scalar_lea.sflag [#allocation3], %s2482_s27 }
  0x1f   : > { %p2208_p3 = pneg %p2497_p13 }
  0x22   : > { %s2491_s22 = scalar_lea.hbm %s2869_s0, %s2852_s28  ;;  %s2211_s20 = scalar_lea.hbm %s2869_s0, 256 }
  0x23   : > { %s2206_s18 = scalar_lea.hbm %s2491_s22, 128  ;;  %p2212_p5 = scmp.lt.s32.totalorder %s2491_s22, %s2869_s0 }
  0x24   : > { %p2207_p2 = scmp.ne.s32.totalorder %s2491_s22, %s2206_s18  ;;  %p2213_p8 = scmp.lt.s32.totalorder %s2211_s20, %s2206_s18 }
  0x26   : > { %p2209_p4 = pnand %p2208_p3, %p2207_p2  ;;  %p2214_p10 = por %p2213_p8, %p2212_p5 }
  0x28   : > { %p2210_p7 = pneg %p2209_p4 }
  0x2a   : > { %p2215_p9 = pnand %p2214_p10, %p2210_p7 }
  0x2c   : > { %2218 = shalt.err (!%p2215_p9)
}
  0x2d   : > { %s2219_s14 = scalar_lea.vmem %s2501_s29, 128  ;;  %s2332_s19 = smov [#allocation2]  }
  0x2e   : > { %p2220_p0 = scmp.ne.s32.totalorder %s2501_s29, %s2219_s14  ;;  %s2224_s23 = sshll.u32 %s2332_s19, 4  ;;  %s2225_s23 = int_to_ptr.vmem [resolvable:$false] %s2224_s23 }
  0x2f   : > { %s2226_s13 = scalar_lea.vmem %s2225_s23, 256  ;;  %p2227_p1 = scmp.lt.s32.totalorder %s2501_s29, %s2225_s23 }
  0x30   : > { %p2222_p2 = pnand %p2220_p0, %p2208_p3  ;;  %p2228_p12 = scmp.lt.s32.totalorder %s2226_s13, %s2219_s14 }
  0x32   : > { %p2223_p4 = pneg %p2222_p2  ;;  %p2229_p11 = por %p2228_p12, %p2227_p1 }
  0x34   : > { %p2230_p5 = pnand %p2229_p11, %p2223_p4 }
  0x36   : > { %2233 = shalt.err (!%p2230_p5)
}
  0x37   : > { %2129 = dma.hbm_to_vmem [thread:$0]  (!%p2497_p13), %s2491_s22, 128, %s2501_s29, %s418_s21  }
  0x38   : > { %p2871_p9 = scmp.lt.s32.totalorder %s2330_s16, 3  ;;  %p2872_p0 = scmp.ge.s32.totalorder %s2330_s16, 1 }
  0x39   : > { %s2874_s13 = sshll.u32 %s2330_s16, 7  ;;  %s2875_s18 = sshll.u32 %s2482_s27, 3 }
  0x3a   : > { %p2534_p7 = pnand %p2872_p0, %p2871_p9  ;;  %s2543_s20 = scalar_lea.hbm %s2833_s1, %s2874_s13 }
  0x3b   : > { %s439_s19 = scalar_lea.vmem [#allocation5], %s2875_s18  ;;  %s436_s29 = scalar_lea.sflag [#allocation6], %s2482_s27 }
  0x3c   : > { %s2873_s26 = scalar_select %p2534_p7, 1, 0 }
  0x3d   : > { %s446_s23 = sshll.u32 %s439_s19, 4  ;;  %s2234_s22 = scalar_lea.hbm %s2543_s20, 128  ;;  %s447_s23 = int_to_ptr.vmem [resolvable:$true] %s446_s23 }
  0x3e   : > { %p2235_p11 = scmp.ne.s32.totalorder %s2543_s20, %s2234_s22  ;;  %s2239_s14 = scalar_lea.hbm %s2833_s1, 256 }
  0x3f   : > { %p2240_p8 = scmp.lt.s32.totalorder %s2543_s20, %s2833_s1  ;;  %p2241_p10 = scmp.lt.s32.totalorder %s2239_s14, %s2234_s22 }
  0x40   : > { %p2237_p12 = pnand %p2235_p11, %p2208_p3 }
  0x41   : > { %p2242_p2 = por %p2241_p10, %p2240_p8 }
  0x42   : > { %p2238_p1 = pneg %p2237_p12 }
  0x44   : > { %p2243_p4 = pnand %p2242_p2, %p2238_p1 }
  0x46   : > { %2246 = shalt.err (!%p2243_p4)
}
  0x47   : > { %s2247_s18 = scalar_lea.vmem %s447_s23, 128  ;;  %s2333_s27 = smov [#allocation5]  }
  0x48   : > { %p2248_p5 = scmp.ne.s32.totalorder %s447_s23, %s2247_s18  ;;  %s2252_s19 = sshll.u32 %s2333_s27, 4  ;;  %s2253_s19 = int_to_ptr.vmem [resolvable:$false] %s2252_s19 }
  0x49   : > { %s2254_s0 = scalar_lea.vmem %s2253_s19, 256  ;;  %p2255_p11 = scmp.lt.s32.totalorder %s447_s23, %s2253_s19 }
  0x4a   : > { %p2250_p9 = pnand %p2248_p5, %p2208_p3  ;;  %p2256_p12 = scmp.lt.s32.totalorder %s2254_s0, %s2247_s18 }
  0x4c   : > { %p2251_p0 = pneg %p2250_p9  ;;  %p2257_p6 = por %p2256_p12, %p2255_p11 }
  0x4e   : > { %p2258_p7 = pnand %p2257_p6, %p2251_p0 }
  0x50   : > { %2261 = shalt.err (!%p2258_p7)
}
  0x51   : > { %2132 = dma.hbm_to_vmem [thread:$0]  (!%p2497_p13), %s2543_s20, 128, %s447_s23, %s436_s29  }
  0x52   : > { %p2876_p1 = scmp.ne.s32.totalorder %s2873_s26, 0 }
  0x53   : > { %s2569_s22 = sand.u32 (!%p2876_p1), 1, %s2322_s30   ;;  %p2877_p6 = scmp.ne.s32.totalorder (!%p2876_p1), %s2865_s24, 0 }
  0x54   : > { %455 = sbr.rel (%p2876_p1) target bundleno = 3578 (0xdfa), region = 76  ;;  %s2572_s21 = sshll.u32 (!%p2876_p1), %s2569_s22, 3 }
  0x55   : > { %s458_s14 = scalar_lea.sflag (!%p2876_p1), [#allocation3], %s2569_s22  ;;  %s461_s13 = scalar_lea.vmem (!%p2876_p1), [#allocation2], %s2572_s21 }
  0x59   : > { %2305 = dma.done.wait (%p2877_p6), %s458_s14, 128  }
  0x5a   : > { %2307 = vsyncadd (%p2877_p6), %s458_s14, 4294967168  ;;  %s467_s15 = scalar_lea.sflag [#allocation6], %s2569_s22  ;;  %s470_s26 = scalar_lea.vmem [#allocation5], %s2572_s21 }
  0x5b   : > { %2309 = dma.done.wait (%p2877_p6), %s467_s15, 128  }
  0x5c   : > { %2311 = vsyncadd (%p2877_p6), %s467_s15, 4294967168  ;;  %vm524_vm0 = vcmask 261120   ;;  %v2586_v0 = vld [vmem:[%s461_s13] sm:$0xff]  ;;  %v556_v7 = vld [vmem:[%s2836_s4 + $0x18] sm:$0xff]  ;;  %v2334_v8 = vmov 0.0   ;;  %vm2335_vm1 = vmmov 0  }
  0x5d   : > { %v525_v1 = vsel %vm524_vm0, %v2586_v0, 0.0  ;;  %2019 = vmatprep.subr.mxu0 %v2334_v8  ;;  %v555_v9 = vld [vmem:[%s2836_s4 + $0x10] sm:$0xff]  ;;  %2027 = vmatprep.mubr.msk.f32.mxu0 %vm2335_vm1, %v2334_v8  ;;  %v554_v10 = vld [vmem:[%s2836_s4 + $0x8] sm:$0xff]  ;;  %v553_v11 = vld [vmem:[%s2836_s4] sm:$0xff]  ;;  %s2336_s24 = smov 120   ;;  %s2337_s29 = smov 96  }
  0x5e   : > { %526 = vadd.xlane.f32.xlu0 %v525_v1  ;;  %2020 = vmatpush3.msra.mxu0 %v556_v7  ;;  %v1945_v16 = vld [vmem:[%s2834_s2] ss:$0 sm:$0xff]  ;;  %s2338_s28 = smov 88   ;;  %vm644_vm2 = vcmask 64512   ;;  %v2644_v28 = vld [vmem:[%s470_s26] sm:$0xff]  ;;  %s2339_s26 = smov 56  }
  0x5f   : > { %2035 = vmatprep.subr.mxu1 %v2334_v8  ;;  %2021 = vmatprep.subr.mxu0 %v2334_v8  ;;  %v1946_v18 = vld [vmem:[%s2835_s3] ss:$0 sm:$0xff]  ;;  %vm720_vm3 = vcmp.eq.f32.partialorder %v2644_v28, 0.0  ;;  %s2340_s18 = smov 64   ;;  %s2341_s27 = smov 80   ;;  %v638_v58 = vld [vmem:[%s2838_s6 + $0x8] sm:$0xff] }
  0x60   : > { %2037 = vmatprep.mubr.msk.f32.mxu1 %vm2335_vm1, %v2334_v8  ;;  %2022 = vmatpush3.msra.mxu0 %v555_v9  ;;  %v1947_v21 = vld [vmem:[%s2837_s5] ss:$0 sm:$0xff]  ;;  %s2342_s19 = smov 112   ;;  %s2343_s20 = smov 48   ;;  %vm1743_vm4 = vcmask 523264  }
  0x61   : > { %2023 = vmatprep.subr.mxu0 %v2334_v8  ;;  %v637_v57 = vld [vmem:[%s2838_s6] sm:$0xff]  ;;  %s2344_s23 = smov 104   ;;  %s2879_s0 = sld [smem:[#allocation18_spill]] }
  0x62   : > { %2024 = vmatpush3.msra.mxu0 %v554_v10  ;;  %s1828_s13 = scalar_lea.sflag [#allocation4], %s2569_s22  ;;  %p2880_p3 = scmp.ne.s32.totalorder %s2866_s25, 0 }
  0x63   : > { %2025 = vmatprep.subr.mxu0 %v2334_v8 }
  0x64   : > { %2026 = vmatpush3.msra.mxu0 %v553_v11 }
  0x65   : > { %2030 = vmatprep.subr.mxu0 %v2334_v8 }
  0xe7   : > { %v527_v2 = vpop.xlane.xlu0 %526 }
  0xe8   : > { %v529_v3 = vmul.f32 0.03125, %v527_v2 }
  0xea   : > { %v530_v4 = vsub.f32 %v2586_v0, %v529_v3 }
  0xec   : > { %v531_v5 = vmul.f32 %v530_v4, %v530_v4 }
  0xee   : > { %v532_v6 = vsel %vm524_vm0, %v531_v5, 0.0 }
  0xef   : > { %533 = vadd.xlane.f32.xlu0 %v532_v6 }
 0x178   : > { %v534_v12 = vpop.xlane.xlu0 %533 }
 0x179   : > { %v535_v13 = vmul.f32 0.03125, %v534_v12 }
 0x17b   : > { %v536_v14 = vadd.f32 1e-05, %v535_v13 }
 0x17d   : > { %2184 = vrsqrt.f32 %v536_v14 }
 0x18a   : > { %v2185_v15 = vpop.eup %2184 }
 0x18b   : > { %v538_v17 = vmul.f32 %v2185_v15, %v530_v4 }
 0x18d   : > { %v545_v19 = vmul.f32 %v1945_v16, %v538_v17 }
 0x18f   : > { %v552_v20 = vadd.f32 %v1946_v18, %v545_v19 }
 0x191   : > { %2028 = vmatmul.mubr.msk.f32.vlgmr.msra.gmra.mxu0 %vm524_vm0, %v552_v20 }
 0x192   : > { %2032 = vmatprep.mubr.msk.f32.mxu0 %vm2335_vm1, %v2334_v8 }
 0x251   : > { %v633_v22 = vpop.f32.mrf.mxu0 }
 0x252   : > { %v2626_v23 = vadd.f32 %v1947_v21, %v633_v22 }
 0x253   : > { %v2029_v24 = vpop.f32.mrf.mxu0 }
 0x254   : > { %809 = vrot.lane.b32.xlu0 %v2626_v23, %s2336_s24  ;;  %642 = vrot.lane.b32.xlu1 %v2626_v23, %s2337_s29  ;;  %s2345_s24 = smov 72   ;;  %s2878_s29 = sld [smem:[#allocation17_spill]] }
 0x258   : > { %811 = vrot.lane.b32.xlu1 %v2626_v23, %s2338_s28  ;;  %s1973_s28 = sshll.u32 %s2444_s17, 7  ;;  %s2347_s17 = smov [#allocation7]  }
 0x259   : > { %s1839_s14 = scalar_lea.hbm %s2879_s0, %s1973_s28 }
 0x2c6   : > { %v643_v25 = vpop.permute.xlu1 %642  ;;  %v810_v27 = vpop.permute.xlu0 %809 }
 0x2c7   : > { %2031 = vmatpush3.xpose.msk.msra.mxu0 %vm644_vm2, %v643_v25  ;;  %v639_v25 = vld [vmem:[%s2838_s6 + $0x10] sm:$0xff] }
 0x2c8   : > { %2040 = vmatprep.subr.mxu0 %v2334_v8 }
 0x2ca   : > { %2033 = vmatmul.mubr.msk.f32.vlgmr.msra.gmra.mxu0 %vm644_vm2, %v2626_v23  ;;  %v812_v26 = vpop.permute.xlu1 %811 }
 0x2cb   : > { %2041 = vmatpush3.xpose.msk.msra.mxu0 %vm644_vm2, %v812_v26  ;;  %2042 = vmatprep.mubr.msk.f32.mxu0 %vm2335_vm1, %v2334_v8 }
 0x2cc   : > { %2050 = vmatprep.subr.mxu0 %v2334_v8 }
 0x2ce   : > { %2043 = vmatmul.mubr.msk.f32.vlgmr.msra.gmra.mxu0 %vm644_vm2, %v810_v27 }
 0x2cf   : > { %2052 = vmatprep.mubr.msk.f32.mxu0 %vm2335_vm1, %v2334_v8  ;;  %2051 = vmatpush3.msra.mxu0 %v638_v58 }
 0x2d0   : > { %2060 = vmatprep.subr.mxu0 %v2334_v8 }
 0x38a   : > { %v715_v29 = vpop.f32.mrf.mxu0 }
 0x38b   : > { %v719_v30 = vmul.f32 0.35355338, %v715_v29 }
 0x38c   : > { %v2034_v31 = vpop.f32.mrf.mxu0 }
 0x38d   : > { %v721_v32 = vsel %vm720_vm3, -1e+09, %v719_v30 }
 0x38e   : > { %v883_v33 = vpop.f32.mrf.mxu0  ;;  %v722_v34 = vsel %vm644_vm2, %v721_v32, -inf }
 0x38f   : > { %v887_v35 = vmul.f32 0.35355338, %v883_v33  ;;  %723 = vmax.xlane.f32.xlu1 %v722_v34 }
 0x390   : > { %v2044_v36 = vpop.f32.mrf.mxu0 }
 0x391   : > { %v888_v37 = vsel %vm720_vm3, -1e+09, %v887_v35 }
 0x392   : > { %v889_v38 = vsel %vm644_vm2, %v888_v37, -inf }
 0x393   : > { %890 = vmax.xlane.f32.xlu0 %v889_v38 }
 0x3a9   : > { %900 = vrot.lane.b32.xlu0 %v2626_v23, %s2339_s26  ;;  %s2346_s26 = smov 40  }
 0x418   : > { %v724_v39 = vpop.xlane.xlu1 %723 }
 0x419   : > { %v725_v40 = vsub.f32 %v721_v32, %v724_v39  ;;  %v640_v39 = vld [vmem:[%s2838_s6 + $0x18] sm:$0xff] }
 0x41b   : > { %v726_v41 = vmul.f32 1.442695, %v725_v40 }
 0x41c   : > { %v891_v42 = vpop.xlane.xlu0 %890 }
 0x41d   : > { %2186 = vpow2.f32 %v726_v41  ;;  %v892_v43 = vsub.f32 %v888_v37, %v891_v42 }
 0x41f   : > { %v893_v44 = vmul.f32 1.442695, %v892_v43 }
 0x420   : > { %v901_v54 = vpop.permute.xlu0 %900 }
 0x421   : > { %2188 = vpow2.f32 %v893_v44 }
 0x42a   : > { %v2187_v45 = vpop.eup %2186 }
 0x42b   : > { %v728_v46 = vsel %vm644_vm2, %v2187_v45, 0.0 }
 0x42c   : > { %729 = vadd.xlane.f32.xlu1 %v728_v46 }
 0x42e   : > { %v2189_v47 = vpop.eup %2188 }
 0x42f   : > { %v895_v48 = vsel %vm644_vm2, %v2189_v47, 0.0 }
 0x430   : > { %896 = vadd.xlane.f32.xlu1 %v895_v48 }
 0x441   : > { %733 = vrot.lane.b32.xlu1 %v2626_v23, %s2340_s18 }
 0x445   : > { %1124 = vrot.lane.b32.xlu1 %v2626_v23, %s2341_s27 }
 0x449   : > { %1122 = vrot.lane.b32.xlu1 %v2626_v23, %s2342_s19 }
 0x4b5   : > { %v730_v49 = vpop.xlane.xlu1 %729 }
 0x4b6   : > { %2190 = vrcp.f32 %v730_v49  ;;  %v1965_v49 = vld [vmem:[%s2839_s7] ss:$0 sm:$0xff] }
 0x4b9   : > { %v897_v50 = vpop.xlane.xlu1 %896 }
 0x4ba   : > { %2192 = vrcp.f32 %v897_v50 }
 0x4bd   : > { %v734_v51 = vpop.permute.xlu1 %733 }
 0x4be   : > { %2036 = vmatpush3.msra.mxu1 %v734_v51 }
 0x4bf   : > { %2045 = vmatprep.subr.mxu1 %v2334_v8 }
 0x4c1   : > { %v1125_v60 = vpop.permute.xlu1 %1124 }
 0x4c3   : > { %v2191_v52 = vpop.eup %2190 }
 0x4c4   : > { %v732_v53 = vmul.f32 %v2191_v52, %v2187_v45 }
 0x4c5   : > { %v1123_v1 = vpop.permute.xlu1 %1122 }
 0x4c6   : > { %2038 = vmatmul.mubr.msk.f32.vlgmr.msra.gmra.mxu1 %vm644_vm2, %v732_v53 }
 0x4c7   : > { %v2193_v55 = vpop.eup %2192  ;;  %2046 = vmatpush3.msra.mxu1 %v901_v54  ;;  %2047 = vmatprep.mubr.msk.f32.mxu1 %vm2335_vm1, %v2334_v8 }
 0x4c8   : > { %v899_v56 = vmul.f32 %v2193_v55, %v2189_v47  ;;  %2055 = vmatprep.subr.mxu1 %v2334_v8 }
 0x4ca   : > { %2048 = vmatmul.mubr.msk.f32.vlgmr.msra.gmra.mxu1 %vm644_vm2, %v899_v56 }
 0x4cb   : > { %2057 = vmatprep.mubr.msk.f32.mxu1 %vm2335_vm1, %v2334_v8  ;;  %2056 = vmatpush3.msra.mxu1 %v637_v57 }
 0x4cc   : > { %2065 = vmatprep.subr.mxu1 %v2334_v8 }
 0x586   : > { %v805_v59 = vpop.f32.mrf.mxu1 }
 0x587   : > { %2058 = vmatmul.mubr.msk.f32.vlgmr.msra.gmra.mxu1 %vm644_vm2, %v805_v59  ;;  %v1645_v59 = vld [vmem:[%s2842_s10 + $0x18] sm:$0xff] }
 0x588   : > { %v2039_v61 = vpop.f32.mrf.mxu1  ;;  %2067 = vmatprep.mubr.msk.f32.mxu1 %vm2335_vm1, %v2334_v8 }
 0x589   : > { %v1642_v61 = vld [vmem:[%s2842_s10] sm:$0xff] }
 0x58a   : > { %v972_v62 = vpop.f32.mrf.mxu1 }
 0x58b   : > { %2053 = vmatmul.mubr.msk.f32.vlgmr.msra.gmra.mxu0 %vm644_vm2, %v972_v62 }
 0x58c   : > { %2061 = vmatpush3.xpose.msk.msra.mxu0 %vm644_vm2, %v1125_v60  ;;  %v2049_v63 = vpop.f32.mrf.mxu1  ;;  %2062 = vmatprep.mubr.msk.f32.mxu0 %vm2335_vm1, %v2334_v8  ;;  %v1643_v60 = vld [vmem:[%s2842_s10 + $0x8] sm:$0xff] }
 0x58d   : > { %2070 = vmatprep.subr.mxu0 %v2334_v8 }
 0x58f   : > { %2063 = vmatmul.mubr.msk.f32.vlgmr.msra.gmra.mxu0 %vm644_vm2, %v1123_v1 }
 0x590   : > { %2072 = vmatprep.mubr.msk.f32.mxu0 %vm2335_vm1, %v2334_v8  ;;  %2071 = vmatpush3.msra.mxu0 %v639_v25 }
 0x591   : > { %2080 = vmatprep.subr.mxu0 %v2334_v8 }
 0x647   : > { %v1118_v2 = vpop.f32.mrf.mxu1 }
 0x649   : > { %v2059_v3 = vpop.f32.mrf.mxu1 }
 0x64a   : > { %v1966_v3 = vld [vmem:[%s2840_s8] ss:$0 sm:$0xff] }
 0x64b   : > { %v1045_v4 = vpop.f32.mrf.mxu0 }
 0x64c   : > { %v1119_v5 = vadd.f32 %v1118_v2, %v1045_v4 }
 0x64d   : > { %v2054_v6 = vpop.f32.mrf.mxu0 }
 0x64f   : > { %v1196_v7 = vpop.f32.mrf.mxu0 }
 0x650   : > { %v1200_v9 = vmul.f32 0.35355338, %v1196_v7 }
 0x651   : > { %v2064_v10 = vpop.f32.mrf.mxu0 }
 0x652   : > { %v1201_v11 = vsel %vm720_vm3, -1e+09, %v1200_v9  ;;  %v1742_v9 = vld [vmem:[%s2844_s12 + $0x38] sm:$0xff]  ;;  %v1741_v10 = vld [vmem:[%s2844_s12 + $0x30] sm:$0xff] }
 0x653   : > { %v1202_v12 = vsel %vm644_vm2, %v1201_v11, -inf }
 0x654   : > { %1203 = vmax.xlane.f32.xlu1 %v1202_v12  ;;  %v1739_v12 = vld [vmem:[%s2844_s12 + $0x20] sm:$0xff] }
 0x665   : > { %1213 = vrot.lane.b32.xlu1 %v2626_v23, %s2343_s20 }
 0x669   : > { %1363 = vrot.lane.b32.xlu1 %v2626_v23, %s2344_s23 }
 0x6dd   : > { %v1204_v13 = vpop.xlane.xlu1 %1203 }
 0x6de   : > { %v1205_v14 = vsub.f32 %v1201_v11, %v1204_v13  ;;  %v1740_v11 = vld [vmem:[%s2844_s12 + $0x28] sm:$0xff]  ;;  %v1738_v13 = vld [vmem:[%s2844_s12 + $0x18] sm:$0xff] }
 0x6e0   : > { %v1206_v15 = vmul.f32 1.442695, %v1205_v14  ;;  %v1737_v14 = vld [vmem:[%s2844_s12 + $0x10] sm:$0xff] }
 0x6e1   : > { %v1214_v16 = vpop.permute.xlu1 %1213 }
 0x6e2   : > { %2194 = vpow2.f32 %v1206_v15  ;;  %2066 = vmatpush3.msra.mxu1 %v1214_v16  ;;  %v1736_v15 = vld [vmem:[%s2844_s12 + $0x8] sm:$0xff]  ;;  %v1735_v16 = vld [vmem:[%s2844_s12] sm:$0xff] }
 0x6e3   : > { %2075 = vmatprep.subr.mxu1 %v2334_v8 }
 0x6e5   : > { %v1364_v24 = vpop.permute.xlu1 %1363 }
 0x6ef   : > { %v2195_v17 = vpop.eup %2194 }
 0x6f0   : > { %v1208_v18 = vsel %vm644_vm2, %v2195_v17, 0.0 }
 0x6f1   : > { %1209 = vadd.xlane.f32.xlu0 %v1208_v18 }
 0x707   : > { %1365 = vrot.lane.b32.xlu0 %v2626_v23, %s2345_s24 }
 0x77a   : > { %v1210_v19 = vpop.xlane.xlu0 %1209 }
 0x77b   : > { %2196 = vrcp.f32 %v1210_v19 }
 0x77e   : > { %v1366_v22 = vpop.permute.xlu0 %1365 }
 0x788   : > { %v2197_v20 = vpop.eup %2196 }
 0x789   : > { %v1212_v21 = vmul.f32 %v2197_v20, %v2195_v17  ;;  %v1968_v17 = vld [vmem:[%s2843_s11] ss:$0 sm:$0xff] }
 0x78b   : > { %2068 = vmatmul.mubr.msk.f32.vlgmr.msra.gmra.mxu1 %vm644_vm2, %v1212_v21 }
 0x78c   : > { %2076 = vmatpush3.xpose.msk.msra.mxu1 %vm644_vm2, %v1366_v22  ;;  %2077 = vmatprep.mubr.msk.f32.mxu1 %vm2335_vm1, %v2334_v8 }
 0x78d   : > { %2085 = vmatprep.subr.mxu1 %v2334_v8 }
 0x78f   : > { %2078 = vmatmul.mubr.msk.f32.vlgmr.msra.gmra.mxu1 %vm644_vm2, %v1364_v24 }
 0x790   : > { %2087 = vmatprep.mubr.msk.f32.mxu1 %vm2335_vm1, %v2334_v8  ;;  %2086 = vmatpush3.msra.mxu1 %v640_v39 }
 0x791   : > { %2101 = vmatprep.subr.mxu1 %v2334_v8 }
 0x84b   : > { %v1285_v26 = vpop.f32.mrf.mxu1 }
 0x84c   : > { %2073 = vmatmul.mubr.msk.f32.vlgmr.msra.gmra.mxu0 %vm644_vm2, %v1285_v26 }
 0x84d   : > { %v2069_v27 = vpop.f32.mrf.mxu1  ;;  %2082 = vmatprep.mubr.msk.f32.mxu0 %vm2335_vm1, %v2334_v8 }
 0x84f   : > { %v1437_v29 = vpop.f32.mrf.mxu1 }
 0x850   : > { %v1441_v30 = vmul.f32 0.35355338, %v1437_v29 }
 0x851   : > { %v2079_v31 = vpop.f32.mrf.mxu1 }
 0x852   : > { %v1442_v32 = vsel %vm720_vm3, -1e+09, %v1441_v30 }
 0x853   : > { %v1443_v33 = vsel %vm644_vm2, %v1442_v32, -inf }
 0x854   : > { %1444 = vmax.xlane.f32.xlu1 %v1443_v33 }
 0x8dd   : > { %v1445_v34 = vpop.xlane.xlu1 %1444 }
 0x8de   : > { %v1446_v35 = vsub.f32 %v1442_v32, %v1445_v34  ;;  %v1971_v32 = vld [vmem:[%s2878_s29] ss:$0 sm:$0xff] }
 0x8e0   : > { %v1447_v36 = vmul.f32 1.442695, %v1446_v35 }
 0x8e2   : > { %2198 = vpow2.f32 %v1447_v36 }
 0x8ef   : > { %v2199_v37 = vpop.eup %2198 }
 0x8f0   : > { %v1449_v38 = vsel %vm644_vm2, %v2199_v37, 0.0 }
 0x8f1   : > { %1450 = vadd.xlane.f32.xlu0 %v1449_v38 }
 0x907   : > { %1454 = vrot.lane.b32.xlu0 %v2626_v23, %s2346_s26  ;;  %s519_s26 = scalar_lea.vmem [#allocation7], %s2572_s21  ;;  %s2266_s21 = sshll.u32 %s2347_s17, 4  ;;  %s2267_s21 = int_to_ptr.vmem [resolvable:$false] %s2266_s21 }
 0x908   : > { %s1841_s18 = sshll.u32 %s519_s26, 4  ;;  %s2268_s20 = scalar_lea.vmem %s2267_s21, 256  ;;  %s1842_s18 = int_to_ptr.vmem [resolvable:$true] %s1841_s18 }
 0x909   : > { %s2262_s15 = scalar_lea.vmem %s1842_s18, 128  ;;  %p2269_p10 = scmp.lt.s32.totalorder %s1842_s18, %s2267_s21 }
 0x90a   : > { %p2263_p13 = scmp.ne.s32.totalorder %s1842_s18, %s2262_s15  ;;  %p2270_p2 = scmp.lt.s32.totalorder %s2268_s20, %s2262_s15 }
 0x90c   : > { %v1358_v28 = vpop.f32.mrf.mxu0  ;;  %p2264_p7 = pnand %p2263_p13, %p2880_p3  ;;  %p2271_p4 = por %p2270_p2, %p2269_p10 }
 0x90d   : > { %v1362_v40 = vadd.f32 %v1358_v28, %v1119_v5  ;;  %v1967_v5 = vld [vmem:[%s2841_s9] ss:$0 sm:$0xff] }
 0x90e   : > { %v2074_v41 = vpop.f32.mrf.mxu0  ;;  %p2265_p8 = pneg %p2264_p7 }
 0x910   : > { %p2272_p5 = pnand %p2271_p4, %p2265_p8 }
 0x97a   : > { %v1451_v42 = vpop.xlane.xlu0 %1450 }
 0x97b   : > { %2200 = vrcp.f32 %v1451_v42 }
 0x97e   : > { %v1455_v43 = vpop.permute.xlu0 %1454 }
 0x97f   : > { %2081 = vmatpush3.msra.mxu0 %v1455_v43 }
 0x980   : > { %2090 = vmatprep.subr.mxu0 %v2334_v8 }
 0x988   : > { %v2201_v44 = vpop.eup %2200 }
 0x989   : > { %v1453_v45 = vmul.f32 %v2201_v44, %v2199_v37 }
 0x98b   : > { %2083 = vmatmul.mubr.msk.f32.vlgmr.msra.gmra.mxu0 %vm644_vm2, %v1453_v45 }
 0x98c   : > { %2098 = vmatprep.mubr.msk.f32.mxu0 %vm2335_vm1, %v2334_v8  ;;  %2091 = vmatpush3.msra.mxu0 %v1645_v59 }
 0x98d   : > { %2092 = vmatprep.subr.mxu0 %v2334_v8 }
 0xa4b   : > { %v1526_v23 = vpop.f32.mrf.mxu0 }
 0xa4c   : > { %2088 = vmatmul.mubr.msk.f32.vlgmr.msra.gmra.mxu1 %vm644_vm2, %v1526_v23 }
 0xa4d   : > { %v2084_v46 = vpop.f32.mrf.mxu0  ;;  %2117 = vmatprep.mubr.msk.f32.mxu1 %vm2335_vm1, %v2334_v8  ;;  %2102 = vmatpush3.msra.mxu1 %v1742_v9 }
 0xa4e   : > { %2103 = vmatprep.subr.mxu1 %v2334_v8 }
 0xa4f   : > { %2104 = vmatpush3.msra.mxu1 %v1741_v10 }
 0xa50   : > { %2105 = vmatprep.subr.mxu1 %v2334_v8 }
 0xa51   : > { %2106 = vmatpush3.msra.mxu1 %v1740_v11 }
 0xa52   : > { %2107 = vmatprep.subr.mxu1 %v2334_v8 }
 0xa53   : > { %2108 = vmatpush3.msra.mxu1 %v1739_v12 }
 0xa54   : > { %2109 = vmatprep.subr.mxu1 %v2334_v8 }
 0xa55   : > { %2110 = vmatpush3.msra.mxu1 %v1738_v13 }
 0xa56   : > { %2111 = vmatprep.subr.mxu1 %v2334_v8 }
 0xa57   : > { %2112 = vmatpush3.msra.mxu1 %v1737_v14 }
 0xa58   : > { %2113 = vmatprep.subr.mxu1 %v2334_v8 }
 0xa59   : > { %2114 = vmatpush3.msra.mxu1 %v1736_v15 }
 0xa5a   : > { %2115 = vmatprep.subr.mxu1 %v2334_v8 }
 0xa5b   : > { %2116 = vmatpush3.msra.mxu1 %v1735_v16 }
 0xb0c   : > { %v1599_v47 = vpop.f32.mrf.mxu1 }
 0xb0d   : > { %v1603_v48 = vadd.f32 %v1599_v47, %v1362_v40 }
 0xb0e   : > { %v2089_v50 = vpop.f32.mrf.mxu1 }
 0xb0f   : > { %v1604_v51 = vadd.f32 %v1603_v48, %v2586_v0  ;;  %v1644_v0 = vld [vmem:[%s2842_s10 + $0x10] sm:$0xff] }
 0xb10   : > { %2093 = vmatpush3.msra.mxu0 %v1644_v0 }
 0xb11   : > { %v2729_v52 = vadd.f32 %v1965_v49, %v1604_v51  ;;  %2094 = vmatprep.subr.mxu0 %v2334_v8 }
 0xb12   : > { %2095 = vmatpush3.msra.mxu0 %v1643_v60 }
 0xb13   : > { %v1615_v53 = vsel %vm524_vm0, %v2729_v52, 0.0  ;;  %2096 = vmatprep.subr.mxu0 %v2334_v8 }
 0xb14   : > { %1616 = vadd.xlane.f32.xlu1 %v1615_v53  ;;  %2097 = vmatpush3.msra.mxu0 %v1642_v61 }
 0xb9d   : > { %v1617_v54 = vpop.xlane.xlu1 %1616 }
 0xb9e   : > { %v1618_v55 = vmul.f32 0.03125, %v1617_v54 }
 0xba0   : > { %v1619_v56 = vsub.f32 %v2729_v52, %v1618_v55 }
 0xba2   : > { %v1620_v57 = vmul.f32 %v1619_v56, %v1619_v56 }
 0xba4   : > { %v1621_v58 = vsel %vm524_vm0, %v1620_v57, 0.0 }
 0xba5   : > { %1622 = vadd.xlane.f32.xlu1 %v1621_v58 }
 0xc2e   : > { %v1623_v62 = vpop.xlane.xlu1 %1622 }
 0xc2f   : > { %v1624_v63 = vmul.f32 0.03125, %v1623_v62 }
 0xc31   : > { %v1625_v1 = vadd.f32 1e-05, %v1624_v63 }
 0xc33   : > { %2202 = vrsqrt.f32 %v1625_v1 }
 0xc40   : > { %v2203_v2 = vpop.eup %2202 }
 0xc41   : > { %v1627_v4 = vmul.f32 %v2203_v2, %v1619_v56 }
 0xc43   : > { %v1634_v6 = vmul.f32 %v1966_v3, %v1627_v4 }
 0xc45   : > { %v1641_v7 = vadd.f32 %v1967_v5, %v1634_v6 }
 0xc47   : > { %2099 = vmatmul.mubr.msk.f32.vlgmr.msra.gmra.mxu0 %vm524_vm0, %v1641_v7 }
 0xd07   : > { %v1722_v18 = vpop.f32.mrf.mxu0 }
 0xd08   : > { %v1723_v19 = vadd.f32 %v1968_v17, %v1722_v18 }
 0xd09   : > { %v2100_v20 = vpop.f32.mrf.mxu0 }
 0xd0a   : > { %v1726_v21 = vmul.f32 %v1723_v19, %v1723_v19 }
 0xd0c   : > { %v1727_v22 = vmul.f32 %v1726_v21, %v1723_v19 }
 0xd0e   : > { %v1728_v24 = vmul.f32 0.044715, %v1727_v22 }
 0xd10   : > { %v1729_v25 = vadd.f32 %v1728_v24, %v1723_v19 }
 0xd12   : > { %v1730_v26 = vmul.f32 0.7978846, %v1729_v25 }
 0xd14   : > { %2204 = vtanh.f32 %v1730_v26 }
 0xd21   : > { %v2205_v27 = vpop.eup %2204 }
 0xd22   : > { %v1732_v29 = vadd.f32 1.0, %v2205_v27 }
 0xd24   : > { %v1733_v8 = vmul.f32 0.5, %v1732_v29 }
 0xd26   : > { %v1734_v30 = vmul.f32 %v1733_v8, %v1723_v19 }
 0xd28   : > { %2118 = vmatmul.mubr.msk.f32.vlgmr.msra.gmra.mxu1 %vm1743_vm4, %v1734_v30 }
 0xde8   : > { %v1813_v31 = vpop.f32.mrf.mxu1 }
 0xde9   : > { %v1817_v33 = vadd.f32 %v1813_v31, %v2729_v52 }
 0xdea   : > { %v2119_v34 = vpop.f32.mrf.mxu1 }
 0xdeb   : > { %v1825_v35 = vadd.f32 %v1971_v32, %v1817_v33 }
 0xded   : > { %1826 = vst.msk [vmem:[%s519_s26] sm:$0xff] %vm524_vm0, %v1825_v35 }
 0xdee   : > { %2275 = shalt.err (!%p2272_p5)
}
 0xdef   : > { %s2276_s23 = scalar_lea.hbm %s1839_s14, 128  ;;  %s2280_s29 = scalar_lea.hbm %s2879_s0, 256 }
 0xdf0   : > { %p2277_p9 = scmp.ne.s32.totalorder %s1839_s14, %s2276_s23  ;;  %p2281_p12 = scmp.lt.s32.totalorder %s1839_s14, %s2879_s0 }
 0xdf1   : > { %p2282_p1 = scmp.lt.s32.totalorder %s2280_s29, %s2276_s23 }
 0xdf2   : > { %p2278_p0 = pnand %p2277_p9, %p2880_p3 }
 0xdf3   : > { %p2283_p6 = por %p2282_p1, %p2281_p12 }
 0xdf4   : > { %p2279_p11 = pneg %p2278_p0 }
 0xdf6   : > { %p2284_p13 = pnand %p2283_p6, %p2279_p11 }
 0xdf8   : > { %2287 = shalt.err (!%p2284_p13)
}
 0xdf9   : > { %2124 = dma.vmem_to_hbm [thread:$0]  (%p2880_p3), %s1842_s18, 128, %s1839_s14, %s1828_s13  }
 0xdfa PF: > { %s2881_s27 = sld [smem:[#allocation11_spill]]  ;;  %p2884_p8 = scmp.ge.s32.totalorder %s2330_s16, 2 }
 0xdfb   : > { %s2882_s19 = sld [smem:[#allocation15_spill]] }
 0xe00   : > { %s1853_s15 = sand.u32 1, %s2881_s27  }
 0xe01   : > { %p2883_p7 = scmp.ne.s32.totalorder %s2882_s19, 0  ;;  %s1854_s17 = scalar_lea.sflag [#allocation4], %s1853_s15 }
 0xe03   : > { %p2134_p10 = pnand %p2884_p8, %p2883_p7 }
 0xe05   : > { %p2135_p2 = pneg %p2134_p10 }
 0xe07   : > { %2313 = dma.done.wait (%p2135_p2), %s1854_s17, 128  }
 0xe08   : > { %2315 = vsyncadd (%p2135_p2), %s1854_s17, 4294967168  ;;  %s2885_s16 = sld [smem:[#allocation13_spill]]  ;;  %s2888_s29 = smov %s2322_s30 }
 0xe09   : > { %s2886_s21 = sld [smem:[#allocation12_spill]] }
 0xe0a   : > { %s2887_s15 = sld [smem:[#allocation14_spill]] }
 0xe0e   : > { %p30_p4 = scmp.ge.s32.totalorder %s2885_s16, 4  }
 0xe0f   : > { %s2889_s30 = smov %s2886_s21 }
 0xe10   :  { %32 = sbr.rel (!%p30_p4) target bundleno = 11 (0xb), region = 134 }
 0xe15   :  { %1859 = vsyncpa [#allocation3], 1 }
 0xe16   :  { %1861 = vsyncpa [#allocation3 + $0x1], 1 }
 0xe17   :  { %1862 = vsyncpa [#allocation6], 1 }
 0xe18   :  { %1864 = vsyncpa [#allocation6 + $0x1], 1 }
 0xe19   :  { %1865 = vsyncpa [#allocation4], 1 }
 0xe1a   :  { %1867 = vsyncpa [#allocation4 + $0x1], 1 }

</bundles_post_ra>
